<compile_context>
chip_gen: v6e
topology: v6e:2x2x1
jax: 0.10.0
libtpu: 0.0.40
codegen_flags: <defaults>
</compile_context>

<pallas_src>
import functools

import jax
import jax.numpy as jnp
import numpy as np
from jax.experimental import pallas as pl
from jax.experimental.pallas import tpu as pltpu


# ----------------------------------------------------------------------------- #
# Helpers
# ----------------------------------------------------------------------------- #
def _round_up(x, m):
    return ((x + m - 1) // m) * m


def _pick_chunk(T, target):
    """Largest chunk <= target that divides T (keeps the recurrence exact, no time padding)."""
    c = max(1, min(int(target), int(T)))
    while T % c:
        c -= 1
    return c


def _reorder_gates_ifgo_to_ifog(a, H):
    """PyTorch packs LSTM gate columns as (i, f, g, o).  Reorder to (i, f, o | g) so the kernel
    applies sigmoid to one contiguous 3H slice and tanh to the trailing H slice."""
    i, f, g, o = (a[..., k * H:(k + 1) * H] for k in range(4))
    return jnp.concatenate([i, f, o, g], axis=-1)


_SINGLE_BUFFER_OK = None


def _single_buffer_supported():
    """Probe whether this JAX build accepts pipeline_mode=pl.Buffered(1) on a BlockSpec
    (single-buffering of grid-invariant weight blocks).  Fall back to default double
    buffering if the probe fails, so the model always runs."""
    global _SINGLE_BUFFER_OK
    if _SINGLE_BUFFER_OK is None:
        try:
            def _k(x_ref, o_ref):
                o_ref[...] = x_ref[...] + 1.0

            spec = pl.BlockSpec((8, 128), lambda i: (0, 0), pipeline_mode=pl.Buffered(1))
            out = pl.pallas_call(
                _k,
                out_shape=jax.ShapeDtypeStruct((8, 128), jnp.float32),
                grid=(1,),
                in_specs=[spec],
                out_specs=pl.BlockSpec((8, 128), lambda i: (0, 0)),
            )(jnp.zeros((8, 128), jnp.float32))
            jax.block_until_ready(out)
            _SINGLE_BUFFER_OK = True
        except Exception:
            _SINGLE_BUFFER_OK = False
    return _SINGLE_BUFFER_OK


def _const_spec(block_shape):
    """BlockSpec for a grid-invariant (weight/bias) operand; single-buffered when supported
    so a large constant-index block does not waste a second VMEM buffer."""
    imap = lambda i: tuple(0 for _ in block_shape)
    if _single_buffer_supported():
        return pl.BlockSpec(block_shape, imap, pipeline_mode=pl.Buffered(1))
    return pl.BlockSpec(block_shape, imap)


# ----------------------------------------------------------------------------- #
# Pallas kernel: one (bi)directional LSTM layer, T-chunked, optional fused FC head
# ----------------------------------------------------------------------------- #
def _bilstm_layer_kernel(*refs, num_dirs, num_slabs, chunk, batch, hidden, fuse_fc):
    """Processes one T-chunk per grid step.

    Input refs (in order):
      for d in dirs: for j in slabs: x[d][j]  (chunk*Bp, Dj) bf16   (dir 1 gets reversed chunks)
      for j in slabs: w_ih[j]                  (nd, Dj, 4H)  bf16   gate cols (i, f, o | g)
      w_hh                                     (nd, H, 4H)   bf16
      b                                        (nd, 1, 4H)   f32    (b_ih + b_hh)
      [fuse_fc] w_fc                           (nd, H, Vp)   bf16
      [fuse_fc] b_fc                           (1, Vp)       f32
    Output refs:
      per dir: hidden slab (chunk*Bp, H) bf16   OR   partial logits (chunk*Bp, Vp) f32
    Scratch refs:
      per dir: h (Bp,H) f32, c (Bp,H) f32, gates (chunk*Bp, 4H) f32, [hseq (chunk*Bp,H) bf16]
    """
    H = hidden
    Bp = batch
    idx = 0
    x_refs = []
    for _d in range(num_dirs):
        x_refs.append(list(refs[idx:idx + num_slabs]))
        idx += num_slabs
    w_ih_refs = list(refs[idx:idx + num_slabs]); idx += num_slabs
    w_hh_ref = refs[idx]; idx += 1
    b_ref = refs[idx]; idx += 1
    if fuse_fc:
        w_fc_ref = refs[idx]; idx += 1
        b_fc_ref = refs[idx]; idx += 1
    out_refs = list(refs[idx:idx + num_dirs]); idx += num_dirs
    h_scr = list(refs[idx:idx + num_dirs]); idx += num_dirs
    c_scr = list(refs[idx:idx + num_dirs]); idx += num_dirs
    g_scr = list(refs[idx:idx + num_dirs]); idx += num_dirs
    hseq_scr = None
    if fuse_fc:
        hseq_scr = list(refs[idx:idx + num_dirs]); idx += num_dirs

    # ---- init carried state on the first chunk (persists across grid steps) --------
    @pl.when(pl.program_id(0) == 0)
    def _init():
        for d in range(num_dirs):
            h_scr[d][...] = jnp.zeros((Bp, H), jnp.float32)
            c_scr[d][...] = jnp.zeros((Bp, H), jnp.float32)

    # ---- hoisted input projection: one full-M MXU matmul per (direction, slab) -----
    # (bias folded in here, so nothing but h@W_hh is left inside the time loop)
    for d in range(num_dirs):
        acc = None
        for j in range(num_slabs):
            xj = x_refs[d][j][...]                                     # (chunk*Bp, Dj) bf16
            pj = jnp.dot(xj, w_ih_refs[j][d], preferred_element_type=jnp.float32)
            acc = pj if acc is None else acc + pj
        g_scr[d][...] = acc + b_ref[d]                                 # (chunk*Bp, 4H) f32

    # loop-invariant recurrent weights, loaded once per chunk
    w_hh = [w_hh_ref[d] for d in range(num_dirs)]                      # (H, 4H) bf16

    def step(t, carry):
        # two independent per-direction sequences so the scheduler can overlap
        # dir-1 MXU pushes with dir-0 EUP/VPU gate math
        for d in range(num_dirs):
            tt = t if d == 0 else chunk - 1 - t          # reverse dir walks its chunk backwards
            row = pl.multiple_of(tt * Bp, 8)             # Bp is a multiple of 8
            h = h_scr[d][...]                            # (Bp, H) f32 carry
            c = c_scr[d][...]
            g = (g_scr[d][pl.ds(row, Bp), :]
                 + jnp.dot(h.astype(jnp.bfloat16), w_hh[d],
                           preferred_element_type=jnp.float32))        # (Bp, 4H) f32
            sig = jax.nn.sigmoid(g[:, :3 * H])           # gates packed (i, f, o | g)
            g_in = jnp.tanh(g[:, 3 * H:])
            i_g = sig[:, :H]
            f_g = sig[:, H:2 * H]
            o_g = sig[:, 2 * H:]
            c_new = f_g * c + i_g * g_in
            h_new = o_g * jnp.tanh(c_new)
            h_scr[d][...] = h_new
            c_scr[d][...] = c_new
            h_bf = h_new.astype(jnp.bfloat16)
            if fuse_fc:
                hseq_scr[d][pl.ds(row, Bp), :] = h_bf
            else:
                out_refs[d][pl.ds(row, Bp), :] = h_bf
        return carry

    jax.lax.fori_loop(0, chunk, step, 0)

    # ---- fused FC head: per-direction partial logits, one big matmul per chunk -----
    if fuse_fc:
        for d in range(num_dirs):
            lg = jnp.dot(hseq_scr[d][...], w_fc_ref[d],
                         preferred_element_type=jnp.float32)           # (chunk*Bp, Vp) f32
            if d == 0:
                lg = lg + b_fc_ref[...]
            out_refs[d][...] = lg


# ----------------------------------------------------------------------------- #
# Layer wrapper
# ----------------------------------------------------------------------------- #
def lstm_layer_pallas(x_slabs, layer_params, *, batch, chunk_t=64, fc=None):
    """One (bi)directional LSTM layer as a single T-chunked pallas_call.

    x_slabs      : list of (T*Bp, Dj) bf16 time-major-flattened input slabs (row = t*Bp + b).
                   Layer 0: [bert features]; deeper layers: [fwd_hidden, rev_hidden] of the
                   previous layer, so no XLA concat is materialised between layers.
    layer_params : per direction (w_ih (4H,Dtot), w_hh (4H,H), b_ih (4H,), b_hh (4H,)) PyTorch layout.
    batch        : Bp, the sublane-padded batch size.
    fc           : optional (fc_w (V, nd*H), fc_b (V,)) -> fuse the FC head into this layer and
                   return per-direction partial logits (T*Bp, Vp) f32 instead of hidden slabs.
    """
    num_dirs = len(layer_params)
    H = layer_params[0][1].shape[1]
    G = 4 * H
    Bp = int(batch)
    rows = int(x_slabs[0].shape[0])
    T = rows // Bp
    slab_dims = [int(s.shape[-1]) for s in x_slabs]
    num_slabs = len(x_slabs)

    chunk = _pick_chunk(T, chunk_t)
    nchunks = T // chunk
    rpc = chunk * Bp                                                    # rows per chunk

    # ---- pack weights (gate columns reordered to (i, f, o | g)) --------------------
    w_ih_slabs = []
    off = 0
    for Dj in slab_dims:
        per_dir = []
        for (w_ih_d, _w_hh_d, _b1, _b2) in layer_params:
            per_dir.append(_reorder_gates_ifgo_to_ifog(w_ih_d[:, off:off + Dj].T, H))
        w_ih_slabs.append(jnp.stack(per_dir).astype(jnp.bfloat16))      # (nd, Dj, 4H)
        off += Dj
    w_hh_all = jnp.stack(
        [_reorder_gates_ifgo_to_ifog(p[1].T, H) for p in layer_params]
    ).astype(jnp.bfloat16)                                              # (nd, H, 4H)
    b_all = jnp.stack(
        [_reorder_gates_ifgo_to_ifog((p[2] + p[3])[None, :], H) for p in layer_params]
    ).astype(jnp.float32)                                               # (nd, 1, 4H)

    fuse_fc = fc is not None
    Vp = 0
    if fuse_fc:
        fc_w, fc_b = fc
        V = fc_w.shape[0]
        Vp = _round_up(V, 128)                                          # lane-dense output
        wfc = jnp.stack(
            [jnp.pad(fc_w[:, d * H:(d + 1) * H].T, ((0, 0), (0, Vp - V)))
             for d in range(num_dirs)]).astype(jnp.bfloat16)            # (nd, H, Vp)
        bfc = jnp.pad(fc_b.astype(jnp.float32)[None, :], ((0, 0), (0, Vp - V)))  # (1, Vp)

    fwd_map = lambda i: (i, 0)
    rev_map = lambda i: (nchunks - 1 - i, 0)                            # reverse dir walks chunks backwards

    ins, in_specs = [], []
    for d in range(num_dirs):
        imap = fwd_map if d == 0 else rev_map
        for s, Dj in zip(x_slabs, slab_dims):
            ins.append(s)
            in_specs.append(pl.BlockSpec((rpc, Dj), imap))
    for w in w_ih_slabs:
        ins.append(w)
        in_specs.append(_const_spec(tuple(w.shape)))
    ins.append(w_hh_all)
    in_specs.append(_const_spec(tuple(w_hh_all.shape)))
    ins.append(b_all)
    in_specs.append(_const_spec(tuple(b_all.shape)))
    if fuse_fc:
        ins.append(wfc)
        in_specs.append(_const_spec(tuple(wfc.shape)))
        ins.append(bfc)
        in_specs.append(_const_spec(tuple(bfc.shape)))

    out_shapes, out_specs = [], []
    for d in range(num_dirs):
        imap = fwd_map if d == 0 else rev_map
        if fuse_fc:
            out_shapes.append(jax.ShapeDtypeStruct((rows, Vp), jnp.float32))
            out_specs.append(pl.BlockSpec((rpc, Vp), imap))
        else:
            out_shapes.append(jax.ShapeDtypeStruct((rows, H), jnp.bfloat16))
            out_specs.append(pl.BlockSpec((rpc, H), imap))

    scratch = ([pltpu.VMEM((Bp, H), jnp.float32) for _ in range(num_dirs)]        # h carry
               + [pltpu.VMEM((Bp, H), jnp.float32) for _ in range(num_dirs)]      # c carry
               + [pltpu.VMEM((rpc, G), jnp.float32) for _ in range(num_dirs)])    # gate precompute
    if fuse_fc:
        scratch += [pltpu.VMEM((rpc, H), jnp.bfloat16) for _ in range(num_dirs)]  # chunk hidden

    # ---- explicit VMEM budget (review: default scoped limit is only 16/32 MiB) -----
    need = 0
    need += 2 * num_dirs * sum(rpc * Dj * 2 for Dj in slab_dims)        # x blocks, double-buffered
    need += sum(int(w.size) * 2 for w in w_ih_slabs) + int(w_hh_all.size) * 2
    need += int(b_all.size) * 4
    if fuse_fc:
        need += int(wfc.size) * 2 + int(bfc.size) * 4
        need += 2 * num_dirs * rpc * Vp * 4 + num_dirs * rpc * H * 2
    else:
        need += 2 * num_dirs * rpc * H * 2
    need += num_dirs * (2 * Bp * H * 4 + rpc * G * 4)
    vmem_limit = int(min(64 << 20, max(32 << 20, 2 * need + (8 << 20))))
    # TODO(synk): at production sizes (H=768, D=1536) derive chunk_t from this budget per chip
    # generation (64 MiB VMEM on v7x), and on v7x split the two directions across the two
    # TensorCores via a leading "parallel" grid axis.

    kernel = functools.partial(
        _bilstm_layer_kernel, num_dirs=num_dirs, num_slabs=num_slabs,
        chunk=chunk, batch=Bp, hidden=H, fuse_fc=fuse_fc)

    outs = pl.pallas_call(
        kernel,
        out_shape=tuple(out_shapes),
        grid=(nchunks,),
        in_specs=in_specs,
        out_specs=tuple(out_specs),
        scratch_shapes=scratch,
        compiler_params=pltpu.CompilerParams(
            dimension_semantics=("arbitrary",),        # recurrence carried across chunks
            vmem_limit_bytes=vmem_limit),
    )(*ins)
    if not isinstance(outs, (list, tuple)):
        outs = (outs,)
    return list(outs)


# ----------------------------------------------------------------------------- #
# Model: BERT-feature stand-in (frozen / no_grad) + multi-layer BiLSTM + fused FC
# ----------------------------------------------------------------------------- #
def init_params(key, *, vocab_size, bert_hidden, lstm_hidden, lstm_layers,
                bidirectional, max_seq):
    params = {}
    k = key

    def nxt():
        nonlocal k
        k, sub = jax.random.split(k)
        return sub

    # ---- frozen "protein_bert" stand-in parameters --------------------------
    params["tok_emb"] = jax.random.normal(nxt(), (vocab_size, bert_hidden), jnp.float32) * 0.02
    params["pos_emb"] = jax.random.normal(nxt(), (max_seq, bert_hidden), jnp.float32) * 0.02
    params["ln_gamma"] = jnp.ones((bert_hidden,), jnp.float32)
    params["ln_beta"] = jnp.zeros((bert_hidden,), jnp.float32)

    # ---- LSTM parameters (PyTorch layout) ------------------------------------
    num_dirs = 2 if bidirectional else 1
    bound = 1.0 / np.sqrt(lstm_hidden)
    lstm = []
    for layer in range(lstm_layers):
        in_size = bert_hidden if layer == 0 else lstm_hidden * num_dirs
        dirs = []
        for _ in range(num_dirs):
            w_ih = jax.random.uniform(nxt(), (4 * lstm_hidden, in_size), jnp.float32, -bound, bound)
            w_hh = jax.random.uniform(nxt(), (4 * lstm_hidden, lstm_hidden), jnp.float32, -bound, bound)
            b_ih = jax.random.uniform(nxt(), (4 * lstm_hidden,), jnp.float32, -bound, bound)
            b_hh = jax.random.uniform(nxt(), (4 * lstm_hidden,), jnp.float32, -bound, bound)
            dirs.append((w_ih, w_hh, b_ih, b_hh))
        lstm.append(dirs)
    params["lstm"] = lstm

    # ---- FC head -------------------------------------------------------------
    fc_in = lstm_hidden * num_dirs
    fbound = 1.0 / np.sqrt(fc_in)
    params["fc_w"] = jax.random.uniform(nxt(), (vocab_size, fc_in), jnp.float32, -fbound, fbound)
    params["fc_b"] = jax.random.uniform(nxt(), (vocab_size,), jnp.float32, -fbound, fbound)
    return params


def bert_features(params, input_ids, attention_mask):
    """Frozen feature extractor stand-in for BertModel(...).last_hidden_state, emitted
    SEQUENCE-MAJOR (T, B, D) so no full-tensor transpose is needed before the LSTM.

    # TODO(synk): the pretrained ProteinBERT encoder stack cannot be reproduced without its
    # checkpoint; stand-in = token embedding + position embedding + LayerNorm (no_grad).
    """
    del attention_mask  # mask only influences attention inside the real encoder
    T = input_ids.shape[1]
    ids_t = input_ids.T                                                    # (T, B) - tiny transpose
    x = params["tok_emb"][ids_t] + params["pos_emb"][:T][:, None, :]       # (T, B, D)
    mu = jnp.mean(x, axis=-1, keepdims=True)
    var = jnp.mean((x - mu) ** 2, axis=-1, keepdims=True)
    x = (x - mu) * jax.lax.rsqrt(var + 1e-12)
    return x * params["ln_gamma"] + params["ln_beta"]


def lstm_model_forward(params, input_ids, attention_mask, *, lstm_chunk_t=64):
    """Pallas implementation of LSTMModel.forward (inference semantics; inter-layer
    dropout is identity in eval mode)."""
    B, T = input_ids.shape
    feats = bert_features(params, input_ids, attention_mask)              # (T, B, D) f32
    Bp = _round_up(B, 8)                                                   # sublane-align the batch
    if Bp != B:
        feats = jnp.pad(feats, ((0, 0), (0, Bp - B), (0, 0)))
    D = feats.shape[-1]
    slabs = [feats.astype(jnp.bfloat16).reshape(T * Bp, D)]                # time-major-flattened

    V = params["fc_w"].shape[0]
    n_layers = len(params["lstm"])
    logits = None
    for li, dirs in enumerate(params["lstm"]):
        last = li == n_layers - 1
        if last:
            partials = lstm_layer_pallas(slabs, dirs, batch=Bp, chunk_t=lstm_chunk_t,
                                         fc=(params["fc_w"], params["fc_b"]))
            logits = partials[0]
            for p in partials[1:]:
                logits = logits + p                                        # (T*Bp, Vp) f32
        else:
            slabs = lstm_layer_pallas(slabs, dirs, batch=Bp, chunk_t=lstm_chunk_t)
            # inter-layer dropout (p=0.3) is identity in eval mode

    logits = logits.reshape(T, Bp, -1)[:, :B, :V]
    return jnp.transpose(logits, (1, 0, 2))                                # (B, T, V) batch_first


# ----------------------------------------------------------------------------- #
# Pure-JAX reference mirroring the kernel math (bf16 MXU inputs, f32 gates/state)
# ----------------------------------------------------------------------------- #
def lstm_model_reference(params, input_ids, attention_mask):
    feats = bert_features(params, input_ids, attention_mask)              # (T, B, D)
    slabs = [feats.astype(jnp.bfloat16)]

    def run_dir(x_slabs, w_ih, w_hh, b_ih, b_hh, reverse):
        H = w_hh.shape[1]
        B = x_slabs[0].shape[1]
        w_parts, off = [], 0
        for s in x_slabs:
            Dj = s.shape[-1]
            w_parts.append(w_ih[:, off:off + Dj].T.astype(jnp.bfloat16))
            off += Dj
        w_h = w_hh.T.astype(jnp.bfloat16)
        b = (b_ih + b_hh)[None, :].astype(jnp.float32)
        seqs = [s[::-1] if reverse else s for s in x_slabs]
        gx = sum(jnp.dot(s, w, preferred_element_type=jnp.float32)
                 for s, w in zip(seqs, w_parts)) + b                       # (T, B, 4H) f32

        def step(carry, g_x):
            h, c = carry
            gates = g_x + jnp.dot(h.astype(jnp.bfloat16), w_h,
                                  preferred_element_type=jnp.float32)
            i = jax.nn.sigmoid(gates[:, :H])
            f = jax.nn.sigmoid(gates[:, H:2 * H])
            g = jnp.tanh(gates[:, 2 * H:3 * H])
            o = jax.nn.sigmoid(gates[:, 3 * H:])
            c = f * c + i * g
            h = o * jnp.tanh(c)
            return (h, c), h.astype(jnp.bfloat16)

        init = (jnp.zeros((B, H), jnp.float32), jnp.zeros((B, H), jnp.float32))
        _, hs = jax.lax.scan(step, init, gx)
        return hs[::-1] if reverse else hs

    for dirs in params["lstm"]:
        slabs = [run_dir(slabs, *w, reverse=(d == 1)) for d, w in enumerate(dirs)]

    H = params["lstm"][-1][0][1].shape[1]
    logits = sum(
        jnp.dot(s, params["fc_w"][:, d * H:(d + 1) * H].T.astype(jnp.bfloat16),
                preferred_element_type=jnp.float32)
        for d, s in enumerate(slabs)) + params["fc_b"].astype(jnp.float32)
    return jnp.transpose(logits, (1, 0, 2))                                # (B, T, V)


# ----------------------------------------------------------------------------- #
if __name__ == "__main__":
    # Small shapes consistent with the module (real model: hidden=768, bidirectional, 6 layers,
    # ProteinBERT vocab ~30).
    B, T = 2, 8
    VOCAB = 30
    BERT_HIDDEN = 32
    LSTM_HIDDEN = 32
    LSTM_LAYERS = 6
    BIDIRECTIONAL = True

    key = jax.random.PRNGKey(0)
    k_param, k_ids = jax.random.split(key)
    params = init_params(k_param, vocab_size=VOCAB, bert_hidden=BERT_HIDDEN,
                         lstm_hidden=LSTM_HIDDEN, lstm_layers=LSTM_LAYERS,
                         bidirectional=BIDIRECTIONAL, max_seq=T)

    input_ids = jax.random.randint(k_ids, (B, T), 0, VOCAB, dtype=jnp.int32)
    attention_mask = jnp.ones((B, T), jnp.int32)

    # chunk_t=4 -> 2 T-chunks at T=8, exercising the chunked recurrence carry and the
    # reversed-chunk index maps of the backward direction.
    out = lstm_model_forward(params, input_ids, attention_mask, lstm_chunk_t=4)
    out = jax.block_until_ready(out)
    assert out.shape == (B, T, VOCAB), out.shape

    ref = jax.block_until_ready(lstm_model_reference(params, input_ids, attention_mask))
    np.testing.assert_allclose(np.asarray(out), np.asarray(ref), atol=1e-2, rtol=1e-2)

    print("KERNEL_OK")
</pallas_src>

<mosaic_0001>
module attributes {stable_mosaic.version = 11 : i64} {
  func.func @_k(%arg0: i32, %arg1: memref<8x128xf32, #tpu.memory_space<vmem>>, %arg2: memref<8x128xf32, #tpu.memory_space<vmem>>) attributes {dimension_semantics = [#tpu.dimension_semantics<arbitrary>], iteration_bounds = array<i64: 1>, scalar_prefetch = 0 : i64, scratch_operands = 0 : i64, tpu.core_type = #tpu.core_type<tc>, window_params = [{pipeline_mode = #tpu.pipeline_mode<synchronous>, transform_indices = @transform_0, window_bounds = array<i64: 8, 128>}, {pipeline_mode = #tpu.pipeline_mode<synchronous>, transform_indices = @transform_1, window_bounds = array<i64: 8, 128>}]} {
    %c0 = arith.constant 0 : index
    %c0_0 = arith.constant 0 : index
    %0 = vector.load %arg1[%c0, %c0_0] : memref<8x128xf32, #tpu.memory_space<vmem>>, vector<8x128xf32>
    %cst = arith.constant 1.000000e+00 : f32
    %1 = vector.broadcast %cst : f32 to vector<8x128xf32>
    %2 = arith.addf %0, %1 : vector<8x128xf32>
    %c0_1 = arith.constant 0 : index
    %c0_2 = arith.constant 0 : index
    %3 = vector.load %arg2[%c0_1, %c0_2] : memref<8x128xf32, #tpu.memory_space<vmem>>, vector<8x128xf32>
    tpu.vector_store %arg2[%c0_1, %c0_2], %2 {strides = array<i32>} : memref<8x128xf32, #tpu.memory_space<vmem>>, vector<8x128xf32>,
    return
  }
  func.func @transform_0(%arg0: i32) -> (i32, i32) {
    %c0_i32 = arith.constant 0 : i32
    %c0_i32_0 = arith.constant 0 : i32
    %c0_i32_1 = arith.constant 0 : i32
    return %c0_i32, %c0_i32_0 : i32, i32
  }
  func.func @transform_1(%arg0: i32) -> (i32, i32) {
    %c0_i32 = arith.constant 0 : i32
    %c0_i32_0 = arith.constant 0 : i32
    %c0_i32_1 = arith.constant 0 : i32
    return %c0_i32, %c0_i32_0 : i32, i32
  }
}

module attributes {stable_mosaic.version = 11 : i64} {
  func.func @_bilstm_layer_kernel(%arg0: i32, %arg1: memref<32x32xbf16, #tpu.memory_space<vmem>>, %arg2: memref<32x32xbf16, #tpu.memory_space<vmem>>, %arg3: memref<2x32x128xbf16, #tpu.memory_space<vmem>>, %arg4: memref<2x32x128xbf16, #tpu.memory_space<vmem>>, %arg5: memref<2x1x128xf32, #tpu.memory_space<vmem>>, %arg6: memref<32x32xbf16, #tpu.memory_space<vmem>>, %arg7: memref<32x32xbf16, #tpu.memory_space<vmem>>, %arg8: memref<8x32xf32, #tpu.memory_space<vmem>>, %arg9: memref<8x32xf32, #tpu.memory_space<vmem>>, %arg10: memref<8x32xf32, #tpu.memory_space<vmem>>, %arg11: memref<8x32xf32, #tpu.memory_space<vmem>>, %arg12: memref<32x128xf32, #tpu.memory_space<vmem>>, %arg13: memref<32x128xf32, #tpu.memory_space<vmem>>) attributes {dimension_semantics = [#tpu.dimension_semantics<arbitrary>], iteration_bounds = array<i64: 2>, scalar_prefetch = 0 : i64, scratch_operands = 6 : i64, tpu.core_type = #tpu.core_type<tc>, window_params = [{transform_indices = @transform_0, window_bounds = array<i64: 32, 32>}, {transform_indices = @transform_1, window_bounds = array<i64: 32, 32>}, {pipeline_mode = #tpu.pipeline_mode<synchronous>, transform_indices = @transform_2, window_bounds = array<i64: 2, 32, 128>}, {pipeline_mode = #tpu.pipeline_mode<synchronous>, transform_indices = @transform_3, window_bounds = array<i64: 2, 32, 128>}, {pipeline_mode = #tpu.pipeline_mode<synchronous>, transform_indices = @transform_4, window_bounds = array<i64: 2, 1, 128>}, {transform_indices = @transform_5, window_bounds = array<i64: 32, 32>}, {transform_indices = @transform_6, window_bounds = array<i64: 32, 32>}]} {
    %c0_i32 = arith.constant 0 : i32
    %0 = arith.cmpi eq, %arg0, %c0_i32 : i32
    %1 = arith.extui %0 : i1 to i32
    %c0_i32_0 = arith.constant 0 : i32
    %2 = arith.cmpi ne, %1, %c0_i32_0 : i32
    scf.if %2 {
      %cst_28 = arith.constant 0.000000e+00 : f32
      %26 = vector.broadcast %cst_28 : f32 to vector<8x32xf32>
      %c0_29 = arith.constant 0 : index
      %c0_30 = arith.constant 0 : index
      %27 = vector.load %arg8[%c0_29, %c0_30] : memref<8x32xf32, #tpu.memory_space<vmem>>, vector<8x32xf32>
      tpu.vector_store %arg8[%c0_29, %c0_30], %26 {strides = array<i32>} : memref<8x32xf32, #tpu.memory_space<vmem>>, vector<8x32xf32>,
      %cst_31 = arith.constant 0.000000e+00 : f32
      %28 = vector.broadcast %cst_31 : f32 to vector<8x32xf32>
      %c0_32 = arith.constant 0 : index
      %c0_33 = arith.constant 0 : index
      %29 = vector.load %arg10[%c0_32, %c0_33] : memref<8x32xf32, #tpu.memory_space<vmem>>, vector<8x32xf32>
      tpu.vector_store %arg10[%c0_32, %c0_33], %28 {strides = array<i32>} : memref<8x32xf32, #tpu.memory_space<vmem>>, vector<8x32xf32>,
      %cst_34 = arith.constant 0.000000e+00 : f32
      %30 = vector.broadcast %cst_34 : f32 to vector<8x32xf32>
      %c0_35 = arith.constant 0 : index
      %c0_36 = arith.constant 0 : index
      %31 = vector.load %arg9[%c0_35, %c0_36] : memref<8x32xf32, #tpu.memory_space<vmem>>, vector<8x32xf32>
      tpu.vector_store %arg9[%c0_35, %c0_36], %30 {strides = array<i32>} : memref<8x32xf32, #tpu.memory_space<vmem>>, vector<8x32xf32>,
      %cst_37 = arith.constant 0.000000e+00 : f32
      %32 = vector.broadcast %cst_37 : f32 to vector<8x32xf32>
      %c0_38 = arith.constant 0 : index
      %c0_39 = arith.constant 0 : index
      %33 = vector.load %arg11[%c0_38, %c0_39] : memref<8x32xf32, #tpu.memory_space<vmem>>, vector<8x32xf32>
      tpu.vector_store %arg11[%c0_38, %c0_39], %32 {strides = array<i32>} : memref<8x32xf32, #tpu.memory_space<vmem>>, vector<8x32xf32>,
    } else {
    }
    %c0 = arith.constant 0 : index
    %c0_1 = arith.constant 0 : index
    %3 = vector.load %arg1[%c0, %c0_1] : memref<32x32xbf16, #tpu.memory_space<vmem>>, vector<32x32xbf16>
    %c0_2 = arith.constant 0 : index
    %c0_3 = arith.constant 0 : index
    %c0_4 = arith.constant 0 : index
    %4 = vector.load %arg3[%c0_2, %c0_3, %c0_4] : memref<2x32x128xbf16, #tpu.memory_space<vmem>>, vector<1x32x128xbf16>
    %5 = vector.shape_cast %4 : vector<1x32x128xbf16> to vector<32x128xbf16>
    %cst = arith.constant dense<0.000000e+00> : vector<32x128xf32>
    %6 = tpu.matmul %3, %5, %cst {dimension_numbers = #tpu.dot_dimension_numbers<[1], [0], [0], [1], [0, 0, 1, 1], [], []>} : vector<32x32xbf16>, vector<32x128xbf16>, vector<32x128xf32> -> vector<32x128xf32>
    %c0_5 = arith.constant 0 : index
    %c0_6 = arith.constant 0 : index
    %c0_7 = arith.constant 0 : index
    %7 = vector.load %arg5[%c0_5, %c0_6, %c0_7] : memref<2x1x128xf32, #tpu.memory_space<vmem>>, vector<1x1x128xf32>
    %8 = vector.shape_cast %7 : vector<1x1x128xf32> to vector<1x128xf32>
    %9 = vector.broadcast %8 : vector<1x128xf32> to vector<32x128xf32>
    %10 = arith.addf %6, %9 : vector<32x128xf32>
    %c0_8 = arith.constant 0 : index
    %c0_9 = arith.constant 0 : index
    %11 = vector.load %arg12[%c0_8, %c0_9] : memref<32x128xf32, #tpu.memory_space<vmem>>, vector<32x128xf32>
    tpu.vector_store %arg12[%c0_8, %c0_9], %10 {strides = array<i32>} : memref<32x128xf32, #tpu.memory_space<vmem>>, vector<32x128xf32>,
    %c0_10 = arith.constant 0 : index
    %c0_11 = arith.constant 0 : index
    %12 = vector.load %arg2[%c0_10, %c0_11] : memref<32x32xbf16, #tpu.memory_space<vmem>>, vector<32x32xbf16>
    %c1 = arith.constant 1 : index
    %c0_12 = arith.constant 0 : index
    %c0_13 = arith.constant 0 : index
    %13 = vector.load %arg3[%c1, %c0_12, %c0_13] : memref<2x32x128xbf16, #tpu.memory_space<vmem>>, vector<1x32x128xbf16>
    %14 = vector.shape_cast %13 : vector<1x32x128xbf16> to vector<32x128xbf16>
    %cst_14 = arith.constant dense<0.000000e+00> : vector<32x128xf32>
    %15 = tpu.matmul %12, %14, %cst_14 {dimension_numbers = #tpu.dot_dimension_numbers<[1], [0], [0], [1], [0, 0, 1, 1], [], []>} : vector<32x32xbf16>, vector<32x128xbf16>, vector<32x128xf32> -> vector<32x128xf32>
    %c1_15 = arith.constant 1 : index
    %c0_16 = arith.constant 0 : index
    %c0_17 = arith.constant 0 : index
    %16 = vector.load %arg5[%c1_15, %c0_16, %c0_17] : memref<2x1x128xf32, #tpu.memory_space<vmem>>, vector<1x1x128xf32>
    %17 = vector.shape_cast %16 : vector<1x1x128xf32> to vector<1x128xf32>
    %18 = vector.broadcast %17 : vector<1x128xf32> to vector<32x128xf32>
    %19 = arith.addf %15, %18 : vector<32x128xf32>
    %c0_18 = arith.constant 0 : index
    %c0_19 = arith.constant 0 : index
    %20 = vector.load %arg13[%c0_18, %c0_19] : memref<32x128xf32, #tpu.memory_space<vmem>>, vector<32x128xf32>
    tpu.vector_store %arg13[%c0_18, %c0_19], %19 {strides = array<i32>} : memref<32x128xf32, #tpu.memory_space<vmem>>, vector<32x128xf32>,
    %c0_20 = arith.constant 0 : index
    %c0_21 = arith.constant 0 : index
    %c0_22 = arith.constant 0 : index
    %21 = vector.load %arg4[%c0_20, %c0_21, %c0_22] : memref<2x32x128xbf16, #tpu.memory_space<vmem>>, vector<1x32x128xbf16>
    %22 = vector.shape_cast %21 : vector<1x32x128xbf16> to vector<32x128xbf16>
    %c1_23 = arith.constant 1 : index
    %c0_24 = arith.constant 0 : index
    %c0_25 = arith.constant 0 : index
    %23 = vector.load %arg4[%c1_23, %c0_24, %c0_25] : memref<2x32x128xbf16, #tpu.memory_space<vmem>>, vector<1x32x128xbf16>
    %24 = vector.shape_cast %23 : vector<1x32x128xbf16> to vector<32x128xbf16>
    %c0_i32_26 = arith.constant 0 : i32
    %c4_i32 = arith.constant 4 : i32
    %25 = arith.addi %c0_i32_26, %c4_i32 : i32
    %c1_i32 = arith.constant 1 : i32
    scf.for %arg14 = %c0_i32_26 to %25 step %c1_i32  : i32 {
      %c8_i32 = arith.constant 8 : i32
      %26 = arith.muli %arg14, %c8_i32 : i32
      %27 = tpu.assume_multiple %26, 8 : i32
      %c0_28 = arith.constant 0 : index
      %c0_29 = arith.constant 0 : index
      %28 = vector.load %arg8[%c0_28, %c0_29] : memref<8x32xf32, #tpu.memory_space<vmem>>, vector<8x32xf32>
      %c0_30 = arith.constant 0 : index
      %c0_31 = arith.constant 0 : index
      %29 = vector.load %arg10[%c0_30, %c0_31] : memref<8x32xf32, #tpu.memory_space<vmem>>, vector<8x32xf32>
      %30 = arith.index_cast %27 : i32 to index
      %c0_32 = arith.constant 0 : index
      %31 = vector.load %arg12[%30, %c0_32] : memref<32x128xf32, #tpu.memory_space<vmem>>, vector<8x128xf32>
      %32 = arith.truncf %28 : vector<8x32xf32> to vector<8x32xbf16>
      %cst_33 = arith.constant dense<0.000000e+00> : vector<8x128xf32>
      %33 = tpu.matmul %32, %22, %cst_33 {dimension_numbers = #tpu.dot_dimension_numbers<[1], [0], [0], [1], [0, 0, 1, 1], [], []>} : vector<8x32xbf16>, vector<32x128xbf16>, vector<8x128xf32> -> vector<8x128xf32>
      %34 = arith.addf %31, %33 : vector<8x128xf32>
      %35 = vector.extract_strided_slice %34 {offsets = [0, 0], sizes = [8, 96], strides = [1, 1]} : vector<8x128xf32> to vector<8x96xf32>
      %36 = arith.negf %35 : vector<8x96xf32>
      %37 = math.exp %36 : vector<8x96xf32>
      %cst_34 = arith.constant 1.000000e+00 : f32
      %38 = vector.broadcast %cst_34 : f32 to vector<8x96xf32>
      %39 = arith.addf %38, %37 : vector<8x96xf32>
      %40 = arith.divf %38, %39 : vector<8x96xf32>
      %41 = vector.extract_strided_slice %34 {offsets = [0, 96], sizes = [8, 32], strides = [1, 1]} : vector<8x128xf32> to vector<8x32xf32>
      %42 = math.tanh %41 : vector<8x32xf32>
      %43 = vector.extract_strided_slice %40 {offsets = [0, 0], sizes = [8, 32], strides = [1, 1]} : vector<8x96xf32> to vector<8x32xf32>
      %44 = vector.extract_strided_slice %40 {offsets = [0, 32], sizes = [8, 32], strides = [1, 1]} : vector<8x96xf32> to vector<8x32xf32>
      %45 = vector.extract_strided_slice %40 {offsets = [0, 64], sizes = [8, 32], strides = [1, 1]} : vector<8x96xf32> to vector<8x32xf32>
      %46 = arith.mulf %44, %29 : vector<8x32xf32>
      %47 = arith.mulf %43, %42 : vector<8x32xf32>
      %48 = arith.addf %46, %47 : vector<8x32xf32>
      %49 = math.tanh %48 : vector<8x32xf32>
      %50 = arith.mulf %45, %49 : vector<8x32xf32>
      %c0_35 = arith.constant 0 : index
      %c0_36 = arith.constant 0 : index
      %51 = vector.load %arg8[%c0_35, %c0_36] : memref<8x32xf32, #tpu.memory_space<vmem>>, vector<8x32xf32>
      tpu.vector_store %arg8[%c0_35, %c0_36], %50 {strides = array<i32>} : memref<8x32xf32, #tpu.memory_space<vmem>>, vector<8x32xf32>,
      %c0_37 = arith.constant 0 : index
      %c0_38 = arith.constant 0 : index
      %52 = vector.load %arg10[%c0_37, %c0_38] : memref<8x32xf32, #tpu.memory_space<vmem>>, vector<8x32xf32>
      tpu.vector_store %arg10[%c0_37, %c0_38], %48 {strides = array<i32>} : memref<8x32xf32, #tpu.memory_space<vmem>>, vector<8x32xf32>,
      %53 = arith.truncf %50 : vector<8x32xf32> to vector<8x32xbf16>
      %54 = arith.index_cast %27 : i32 to index
      %c0_39 = arith.constant 0 : index
      %55 = vector.load %arg6[%54, %c0_39] : memref<32x32xbf16, #tpu.memory_space<vmem>>, vector<8x32xbf16>
      tpu.vector_store %arg6[%54, %c0_39], %53 {strides = array<i32>} : memref<32x32xbf16, #tpu.memory_space<vmem>>, vector<8x32xbf16>,
      %c3_i32 = arith.constant 3 : i32
      %56 = arith.subi %c3_i32, %arg14 : i32
      %c8_i32_40 = arith.constant 8 : i32
      %57 = arith.muli %56, %c8_i32_40 : i32
      %58 = tpu.assume_multiple %57, 8 : i32
      %c0_41 = arith.constant 0 : index
      %c0_42 = arith.constant 0 : index
      %59 = vector.load %arg9[%c0_41, %c0_42] : memref<8x32xf32, #tpu.memory_space<vmem>>, vector<8x32xf32>
      %c0_43 = arith.constant 0 : index
      %c0_44 = arith.constant 0 : index
      %60 = vector.load %arg11[%c0_43, %c0_44] : memref<8x32xf32, #tpu.memory_space<vmem>>, vector<8x32xf32>
      %61 = arith.index_cast %58 : i32 to index
      %c0_45 = arith.constant 0 : index
      %62 = vector.load %arg13[%61, %c0_45] : memref<32x128xf32, #tpu.memory_space<vmem>>, vector<8x128xf32>
      %63 = arith.truncf %59 : vector<8x32xf32> to vector<8x32xbf16>
      %cst_46 = arith.constant dense<0.000000e+00> : vector<8x128xf32>
      %64 = tpu.matmul %63, %24, %cst_46 {dimension_numbers = #tpu.dot_dimension_numbers<[1], [0], [0], [1], [0, 0, 1, 1], [], []>} : vector<8x32xbf16>, vector<32x128xbf16>, vector<8x128xf32> -> vector<8x128xf32>
      %65 = arith.addf %62, %64 : vector<8x128xf32>
      %66 = vector.extract_strided_slice %65 {offsets = [0, 0], sizes = [8, 96], strides = [1, 1]} : vector<8x128xf32> to vector<8x96xf32>
      %67 = arith.negf %66 : vector<8x96xf32>
      %68 = math.exp %67 : vector<8x96xf32>
      %cst_47 = arith.constant 1.000000e+00 : f32
      %69 = vector.broadcast %cst_47 : f32 to vector<8x96xf32>
      %70 = arith.addf %69, %68 : vector<8x96xf32>
      %71 = arith.divf %69, %70 : vector<8x96xf32>
      %72 = vector.extract_strided_slice %65 {offsets = [0, 96], sizes = [8, 32], strides = [1, 1]} : vector<8x128xf32> to vector<8x32xf32>
      %73 = math.tanh %72 : vector<8x32xf32>
      %74 = vector.extract_strided_slice %71 {offsets = [0, 0], sizes = [8, 32], strides = [1, 1]} : vector<8x96xf32> to vector<8x32xf32>
      %75 = vector.extract_strided_slice %71 {offsets = [0, 32], sizes = [8, 32], strides = [1, 1]} : vector<8x96xf32> to vector<8x32xf32>
      %76 = vector.extract_strided_slice %71 {offsets = [0, 64], sizes = [8, 32], strides = [1, 1]} : vector<8x96xf32> to vector<8x32xf32>
      %77 = arith.mulf %75, %60 : vector<8x32xf32>
      %78 = arith.mulf %74, %73 : vector<8x32xf32>
      %79 = arith.addf %77, %78 : vector<8x32xf32>
      %80 = math.tanh %79 : vector<8x32xf32>
      %81 = arith.mulf %76, %80 : vector<8x32xf32>
      %c0_48 = arith.constant 0 : index
      %c0_49 = arith.constant 0 : index
      %82 = vector.load %arg9[%c0_48, %c0_49] : memref<8x32xf32, #tpu.memory_space<vmem>>, vector<8x32xf32>
      tpu.vector_store %arg9[%c0_48, %c0_49], %81 {strides = array<i32>} : memref<8x32xf32, #tpu.memory_space<vmem>>, vector<8x32xf32>,
      %c0_50 = arith.constant 0 : index
      %c0_51 = arith.constant 0 : index
      %83 = vector.load %arg11[%c0_50, %c0_51] : memref<8x32xf32, #tpu.memory_space<vmem>>, vector<8x32xf32>
      tpu.vector_store %arg11[%c0_50, %c0_51], %79 {strides = array<i32>} : memref<8x32xf32, #tpu.memory_space<vmem>>, vector<8x32xf32>,
      %84 = arith.truncf %81 : vector<8x32xf32> to vector<8x32xbf16>
      %85 = arith.index_cast %58 : i32 to index
      %c0_52 = arith.constant 0 : index
      %86 = vector.load %arg7[%85, %c0_52] : memref<32x32xbf16, #tpu.memory_space<vmem>>, vector<8x32xbf16>
      tpu.vector_store %arg7[%85, %c0_52], %84 {strides = array<i32>} : memref<32x32xbf16, #tpu.memory_space<vmem>>, vector<8x32xbf16>,
    }
    %c4_i32_27 = arith.constant 4 : i32
    return
  }
  func.func @transform_0(%arg0: i32) -> (i32, i32) {
    %c0_i32 = arith.constant 0 : i32
    %c0_i32_0 = arith.constant 0 : i32
    return %arg0, %c0_i32 : i32, i32
  }
  func.func @transform_1(%arg0: i32) -> (i32, i32) {
    %c1_i32 = arith.constant 1 : i32
    %0 = arith.subi %c1_i32, %arg0 : i32
    %c0_i32 = arith.constant 0 : i32
    %c0_i32_0 = arith.constant 0 : i32
    return %0, %c0_i32 : i32, i32
  }
  func.func @transform_2(%arg0: i32) -> (i32, i32, i32) {
    %c0_i32 = arith.constant 0 : i32
    %c0_i32_0 = arith.constant 0 : i32
    %c0_i32_1 = arith.constant 0 : i32
    %c0_i32_2 = arith.constant 0 : i32
    return %c0_i32, %c0_i32_0, %c0_i32_1 : i32, i32, i32
  }
  func.func @transform_3(%arg0: i32) -> (i32, i32, i32) {
    %c0_i32 = arith.constant 0 : i32
    %c0_i32_0 = arith.constant 0 : i32
    %c0_i32_1 = arith.constant 0 : i32
    %c0_i32_2 = arith.constant 0 : i32
    return %c0_i32, %c0_i32_0, %c0_i32_1 : i32, i32, i32
  }
  func.func @transform_4(%arg0: i32) -> (i32, i32, i32) {
    %c0_i32 = arith.constant 0 : i32
    %c0_i32_0 = arith.constant 0 : i32
    %c0_i32_1 = arith.constant 0 : i32
    %c0_i32_2 = arith.constant 0 : i32
    return %c0_i32, %c0_i32_0, %c0_i32_1 : i32, i32, i32
  }
  func.func @transform_5(%arg0: i32) -> (i32, i32) {
    %c0_i32 = arith.constant 0 : i32
    %c0_i32_0 = arith.constant 0 : i32
    return %arg0, %c0_i32 : i32, i32
  }
  func.func @transform_6(%arg0: i32) -> (i32, i32) {
    %c1_i32 = arith.constant 1 : i32
    %0 = arith.subi %c1_i32, %arg0 : i32
    %c0_i32 = arith.constant 0 : i32
    %c0_i32_0 = arith.constant 0 : i32
    return %0, %c0_i32 : i32, i32
  }
}

</mosaic_0001>

<bundles_post_ra>
// kernel: tpu_custom_call.1
= control target key start
LH: loop header
LB: loop body
LE: loop exit
PB: predicated region body
PF: predicated region fallthrough
CT: control target
= control target key end

     0   :  { %6 = vsyncpa [#allocation3], 0  ;;  %s103_s0 = inlined_call_operand.hbm [shape: f32[8,128], index: 0, kind: input, shape index: {}]   ;;  %s104_s1 = inlined_call_operand.hbm [shape: f32[8,128], index: 1, kind: output, shape index: {}]  }
   0x1   :  { %7 = vsyncpa [#allocation4], 0  ;;  %s85_s6 = smov [#allocation2]  }
   0x2   :  { %s14_s7 = sshll.u32 %s85_s6, 4  ;;  %s15_s7 = int_to_ptr.vmem [resolvable:$true] %s14_s7 }
   0x3   :  { %s49_s8 = scalar_lea.vmem %s15_s7, 128  ;;  %p54_p1 = scmp.lt.s32.totalorder %s15_s7, %s15_s7 }
   0x4   :  { %p50_p0 = scmp.ne.s32.totalorder %s15_s7, %s49_s8  ;;  %p55_p2 = scmp.lt.s32.totalorder %s49_s8, %s49_s8 }
   0x6   :  { %p56_p3 = por %p55_p2, %p54_p1 }
   0x8   :  { %p57_p4 = pnand %p56_p3, %p50_p0 }
   0xa   :  { %60 = shalt.err (!%p57_p4)
}
   0xb   :  { %17 = dma.hbm_to_vmem [thread:$0]  %s103_s0, 128, %s15_s7, [#allocation3]  }
   0xc   :  { %81 = dma.done.wait [#allocation3], 128  }
   0xd   :  { %82 = vsyncadd [#allocation3], 4294967168  ;;  %s86_s11 = smov [#allocation5]   ;;  %v21_v0 = vld [vmem:[#allocation2] sm:$0xff] }
   0xe   :  { %s30_s12 = sshll.u32 %s86_s11, 4  ;;  %v22_v1 = vadd.f32 1.0, %v21_v0  ;;  %s31_s12 = int_to_ptr.vmem [resolvable:$true] %s30_s12 }
   0xf   :  { %s61_s13 = scalar_lea.vmem %s31_s12, 128  ;;  %p66_p6 = scmp.lt.s32.totalorder %s31_s12, %s31_s12 }
  0x10   :  { %23 = vst [vmem:[#allocation5] sm:$0xff] %v22_v1  ;;  %p62_p5 = scmp.ne.s32.totalorder %s31_s12, %s61_s13  ;;  %p67_p7 = scmp.lt.s32.totalorder %s61_s13, %s61_s13 }
  0x12   :  { %p68_p8 = por %p67_p7, %p66_p6 }
  0x14   :  { %p69_p9 = pnand %p68_p8, %p62_p5 }
  0x16   :  { %72 = shalt.err (!%p69_p9)
}
  0x17   :  { %33 = dma.vmem_to_hbm [thread:$0]  %s31_s12, 128, %s104_s1, [#allocation4]  }
  0x18   :  { %83 = dma.done.wait [#allocation4], 128  }
  0x19   :  { %84 = vsyncadd [#allocation4], 4294967168 }
  0x1a   :  { %37 = vsyncpa [#allocation3], 1 }
  0x1b   :  { %38 = vsyncpa [#allocation4], 1 }

// kernel: tpu_custom_call.1
= control target key start
LH: loop header
LB: loop body
LE: loop exit
PB: predicated region body
PF: predicated region fallthrough
CT: control target
= control target key end

     0   :  { %s1071_s21 = smov 0   ;;  %s1202_s0 = inlined_call_operand.vmem [shape: bf16[64,32], index: 0, kind: input, shape index: {}]   ;;  %s1203_s1 = inlined_call_operand.vmem [shape: bf16[64,32], index: 1, kind: input, shape index: {}]   ;;  %s1204_s2 = inlined_call_operand.vmem [shape: bf16[2,32,128], index: 2, kind: input, shape index: {}]   ;;  %s1205_s3 = inlined_call_operand.vmem [shape: bf16[2,32,128], index: 3, kind: input, shape index: {}]   ;;  %s1206_s4 = inlined_call_operand.vmem [shape: f32[2,1,128], index: 4, kind: input, shape index: {}]   ;;  %s1207_s5 = inlined_call_operand.vmem [shape: bf16[64,32], index: 5, kind: output, shape index: {0}]   ;;  %s1208_s6 = inlined_call_operand.vmem [shape: bf16[64,32], index: 6, kind: output, shape index: {1}]  }
   0x1 LB: > { %s867_s22 = sadd.s32 4294967295, %s1024_s21   ;;  %p871_p0 = scmp.ge.s32.totalorder %s1024_s21, 1  ;;  %s1024_s21 = sphi %s1071_s21, %s17_s21  }
   0x2   : > { %p233_p1 = scmp.lt.s32.totalorder %s1024_s21, 3 }
   0x4   : > { %p234_p2 = pnand %p871_p0, %p233_p1 }
   0x5   : > { %s872_s23 = sshll.u32 (!%p234_p2), %s867_s22, 2  ;;  %s281_s24 = ssub.s32 (!%p234_p2), 1, %s867_s22 }
   0x6   : > { %237 = sbr.rel (%p234_p2) target bundleno = 946 (0x3b2), region = 40  ;;  %p276_p3 = scmp.lt.s32.totalorder (!%p234_p2), %s872_s23, 7 }
   0x7   : > { %s874_s25 = sshll.u32 (!%p234_p2), %s281_s24, 2  ;;  %p880_p5 = scmp.ne.s32.totalorder (!%p234_p2), %s867_s22, 0 }
   0x8   : > { %p283_p4 = scmp.lt.s32.totalorder (!%p234_p2), %s874_s25, 7 }
   0xb   : > { %s1210_s23 = smov (!%p276_p3, %s872_s23), 7  ;;  %s1212_s25 = smov (!%p283_p4, %s874_s25), 7 }
   0xc   : > { %s873_s26 = sshll.u32 %s1210_s23, 2  ;;  %s875_s30 = sshll.u32 %s1212_s25, 2 }
   0xd   : > { %s279_s29 = scalar_lea.vmem %s1202_s0, %s873_s26  ;;  %s286_s9 = scalar_lea.vmem %s1203_s1, %s875_s30 }
   0xe   : > { %s1088_s12 = scalar_lea.vmem %s1207_s5, %s873_s26  ;;  %s1093_s15 = scalar_lea.vmem %s1208_s6, %s875_s30 }
   0xf   : > { %307 = sbr.rel (%p880_p5) target bundleno = 23 (0x17), region = 44 }
  0x14   : > { %vm308_vm0 = vcmask 261120   ;;  %v1030_v0 = vmov 0.0  }
  0x15   : > { %309 = vst.msk [vmem:[#allocation2] sm:$0xff] %vm308_vm0, %v1030_v0  ;;  %310 = vst.msk [vmem:[#allocation4] sm:$0xff] %vm308_vm0, %v1030_v0 }
  0x16   : > { %311 = vst.msk [vmem:[#allocation3] sm:$0xff] %vm308_vm0, %v1030_v0  ;;  %312 = vst.msk [vmem:[#allocation5] sm:$0xff] %vm308_vm0, %v1030_v0 }
  0x17 PF: > { %v990_v1 = vld [vmem:[%s1204_s2 + $0x8] sm:$0xff]   ;;  %v991_v2 = vld [vmem:[%s1204_s2 + $0x18] sm:$0xff]   ;;  %v992_v3 = vld [vmem:[%s1204_s2] sm:$0xff]   ;;  %vm350_vm1 = vcmask 261120   ;;  %s1157_s24 = smov 0  }
  0x18   : > { %936 = vmatprep.subr.bf16.mxu0 %v990_v1  ;;  %944 = vmatprep.subr.bf16.mxu1 %v991_v2  ;;  %v993_v4 = vld [vmem:[%s1204_s2 + $0x10] sm:$0xff]   ;;  %v994_v5 = vld [vmem:[%s279_s29] sm:$0xff]   ;;  %v996_v7 = vld [vmem:[%s279_s29 + $0x8] sm:$0xff]  }
  0x19   : > { %937 = vmatpush3.bf16.msra.mxu0 %v990_v1  ;;  %945 = vmatpush3.bf16.msra.mxu1 %v991_v2  ;;  %v995_v6 = vld [vmem:[%s286_s9] sm:$0xff]   ;;  %v997_v8 = vld [vmem:[%s286_s9 + $0x8] sm:$0xff]   ;;  %v1134_v13 = vld [vmem:[%s1205_s3 + $0x10] sm:$0xf] }
  0x1a   : > { %938 = vmatprep.subr.bf16.mxu0 %v992_v3  ;;  %946 = vmatprep.subr.bf16.mxu1 %v993_v4  ;;  %v1114_v9 = vld [vmem:[%s1205_s3] sm:$0xf]  ;;  %v1119_v10 = vld [vmem:[%s1205_s3 + $0x4] sm:$0xf]  ;;  %v1124_v11 = vld [vmem:[%s1205_s3 + $0x8] sm:$0xf] }
  0x1b   : > { %940 = vmatprep.mubr.msk.bf16.mxu0 %vm350_vm1, %v994_v5  ;;  %948 = vmatprep.mubr.msk.bf16.mxu1 %vm350_vm1, %v995_v6  ;;  %v1129_v12 = vld [vmem:[%s1205_s3 + $0xc] sm:$0xf]  ;;  %v1139_v14 = vld [vmem:[%s1205_s3 + $0x14] sm:$0xf]  ;;  %v1144_v15 = vld [vmem:[%s1205_s3 + $0x18] sm:$0xf] }
  0x1c   : > { %v1149_v16 = vld [vmem:[%s1205_s3 + $0x1c] sm:$0xf]  ;;  %v881_v17 = vld [vmem:[%s1206_s4] ss:$0 sm:$0xff]  ;;  %v893_v18 = vld [vmem:[%s1206_s4 + $0x1] ss:$0 sm:$0xff] }
  0x1d   : > { %939 = vmatpush3.bf16.msra.mxu0 %v992_v3  ;;  %947 = vmatpush3.bf16.msra.mxu1 %v993_v4 }
  0x20   : > { %941 = vmatmul.mubr.msk.bf16.vlgmr.msra.gmra.mxu0 %vm350_vm1, %v996_v7  ;;  %949 = vmatmul.mubr.msk.bf16.vlgmr.msra.gmra.mxu1 %vm350_vm1, %v997_v8 }
  0xe0   : > { %v942_v19 = vpop.f32.mrf.mxu0  ;;  %v950_v21 = vpop.f32.mrf.mxu1 }
  0xe1   : > { %v400_v20 = vadd.f32 %v942_v19, %v881_v17  ;;  %v498_v22 = vadd.f32 %v950_v21, %v893_v18 }
  0xe2   : > { %v391_v23 = vpop.f32.mrf.mxu0  ;;  %v489_v25 = vpop.f32.mrf.mxu1 }
  0xe3   : > { %408 = vst [vmem:[#allocation6 + $0x10] sm:$0xff] %v400_v20  ;;  %v392_v24 = vadd.f32 %v881_v17, %v391_v23  ;;  %506 = vst [vmem:[#allocation7 + $0x10] sm:$0xff] %v498_v22  ;;  %v490_v26 = vadd.f32 %v893_v18, %v489_v25 }
  0xe4   : > { %v943_v27 = vpop.f32.mrf.mxu0  ;;  %v951_v29 = vpop.f32.mrf.mxu1 }
  0xe5   : > { %406 = vst [vmem:[#allocation6] sm:$0xff] %v392_v24  ;;  %v403_v28 = vadd.f32 %v943_v27, %v881_v17  ;;  %504 = vst [vmem:[#allocation7] sm:$0xff] %v490_v26  ;;  %v501_v30 = vadd.f32 %v951_v29, %v893_v18 }
  0xe6   : > { %v394_v31 = vpop.f32.mrf.mxu0  ;;  %v492_v33 = vpop.f32.mrf.mxu1 }
  0xe7   : > { %409 = vst [vmem:[#allocation6 + $0x18] sm:$0xff] %v403_v28  ;;  %v395_v32 = vadd.f32 %v881_v17, %v394_v31  ;;  %507 = vst [vmem:[#allocation7 + $0x18] sm:$0xff] %v501_v30  ;;  %v493_v34 = vadd.f32 %v893_v18, %v492_v33 }
  0xe9   : > { %407 = vst [vmem:[#allocation6 + $0x8] sm:$0xff] %v395_v32  ;;  %505 = vst [vmem:[#allocation7 + $0x8] sm:$0xff] %v493_v34 }
  0xea LB: >> { %v906_v35 = vcombine.low %v1124_v11, %v1129_v12  ;;  %v913_v36 = vcombine.low %v1144_v15, %v1149_v16  ;;  %v1031_v37 = vmov 0.0   ;;  %v905_v38 = vcombine.low %v1114_v9, %v1119_v10  ;;  %v524_v40 = vld [vmem:[#allocation2] sm:$0xff]  ;;  %v638_v41 = vld [vmem:[#allocation3] sm:$0xff]  ;;  %v525_v42 = vld [vmem:[#allocation4] sm:$0xff]  ;;  %s1033_s25 = smov 32   ;;  %s636_s26 = ssub.s32 3, %s1028_s24  ;;  %s1028_s24 = sphi %s1157_s24, %s522_s24  }
  0xeb   : >> { %952 = vmatprep.subr.bf16.mxu0 %v1031_v37  ;;  %960 = vmatprep.subr.bf16.mxu1 %v1031_v37  ;;  %v912_v39 = vcombine.low %v1134_v13, %v1139_v14  ;;  %vm1032_vm2 = vmmov 0   ;;  %v528_v43 = vpack.c.bf16 %v524_v40, %v524_v40  ;;  %v642_v44 = vpack.c.bf16 %v638_v41, %v638_v41  ;;  %v639_v45 = vld [vmem:[#allocation5] sm:$0xff]  ;;  %s904_s27 = sshll.u32 %s1028_s24, 3  ;;  %s1176_s28 = sshll.u32 %s636_s26, 3 }
  0xec   : >> { %953 = vmatpush3.bf16.msra.mxu0 %v906_v35  ;;  %961 = vmatpush3.bf16.msra.mxu1 %v913_v36  ;;  %s526_s29 = scalar_lea.vmem [#allocation6], %s904_s27  ;;  %s640_s30 = scalar_lea.vmem [#allocation7], %s1176_s28  ;;  %vm634_vm3 = vcmask 257024  }
  0xed   : >> { %954 = vmatprep.subr.bf16.mxu0 %v1031_v37  ;;  %962 = vmatprep.subr.bf16.mxu1 %v1031_v37  ;;  %s1034_s7 = smov 96   ;;  %s1035_s8 = smov 64  }
  0xee   : >> { %956 = vmatprep.mubr.msk.bf16.mxu0 %vm1032_vm2, %v1031_v37  ;;  %964 = vmatprep.mubr.msk.bf16.mxu1 %vm1032_vm2, %v1031_v37  ;;  %s630_s9 = sshra.s32 %s904_s27, 3  ;;  %s744_s11 = sshra.s32 %s1176_s28, 3 }
  0xef   : >> { %593 = vrot.lane.b32.xlu1 %v525_v42, %s1033_s25  ;;  %s910_s10 = sshll.u32 %s630_s9, 2  ;;  %s917_s14 = sshll.u32 %s744_s11, 2 }
  0xf0   : >> { %955 = vmatpush3.bf16.msra.mxu0 %v905_v38  ;;  %963 = vmatpush3.bf16.msra.mxu1 %v912_v39  ;;  %v527_v46 = vld [vmem:[%s526_s29] sm:$0xff]  ;;  %s633_s13 = scalar_lea.vmem %s1088_s12, %s910_s10  ;;  %s747_s16 = scalar_lea.vmem %s1093_s15, %s917_s14 }
  0xf1   : >> { %v641_v47 = vld [vmem:[%s640_s30] sm:$0xff]  ;;  %s522_s24 = sadd.s32 1, %s1028_s24  }
  0xf2   : >> { %p519_p6 = scmp.ge.s32.totalorder %s522_s24, 4  }
  0xf3   : >> { %957 = vmatmul.mubr.msk.bf16.vlgmr.msra.gmra.mxu0 %vm350_vm1, %v528_v43  ;;  %965 = vmatmul.mubr.msk.bf16.vlgmr.msra.gmra.mxu1 %vm350_vm1, %v642_v44 }
  0xf4   : >> { %707 = vrot.lane.b32.xlu1 %v639_v45, %s1033_s25 }
 0x161   : >> { %v594_v8 = vpop.permute.xlu1 %593 }
 0x166   : >> { %v708_v18 = vpop.permute.xlu1 %707 }
 0x1b3   : >> { %v578_v48 = vpop.f32.mrf.mxu0  ;;  %v692_v49 = vpop.f32.mrf.mxu1 }
 0x1b4   : >> { %v584_v50 = vadd.f32 %v578_v48, %v527_v46  ;;  %v698_v51 = vadd.f32 %v692_v49, %v641_v47 }
 0x1b5   : >> { %v958_v52 = vpop.f32.mrf.mxu0  ;;  %v966_v53 = vpop.f32.mrf.mxu1 }
 0x1b6   : >> { %998 = vtanh.f32 %v584_v50  ;;  %v908_v60 = vmul.f32 -1.442695, %v584_v50  ;;  %v915_v61 = vmul.f32 -1.442695, %v698_v51 }
 0x1b7   : >> { %v581_v54 = vpop.f32.mrf.mxu0  ;;  %v695_v55 = vpop.f32.mrf.mxu1  ;;  %1000 = vtanh.f32 %v698_v51 }
 0x1b8   : >> { %1002 = vpow2.f32 %v908_v60 }
 0x1b9   : >> { %v959_v56 = vpop.f32.mrf.mxu0  ;;  %v967_v57 = vpop.f32.mrf.mxu1  ;;  %1004 = vpow2.f32 %v915_v61 }
 0x1c3   : >> { %v999_v58 = vpop.eup %998 }
 0x1c4   : >> { %598 = vrot.lane.b32.xlu0 %v999_v58, %s1033_s25  ;;  %v1001_v59 = vpop.eup %1000 }
 0x1c5   : >> { %v1003_v62 = vpop.eup %1002 }
 0x1c6   : >> { %v588_v63 = vadd.f32 1.0, %v1003_v62  ;;  %v1005_v0 = vpop.eup %1004 }
 0x1c7   : >> { %v702_v1 = vadd.f32 1.0, %v1005_v0 }
 0x1c8   : >> { %712 = vrot.lane.b32.xlu0 %v1001_v59, %s1033_s25  ;;  %1006 = vrcp.f32 %v588_v63 }
 0x1c9   : >> { %1008 = vrcp.f32 %v702_v1 }
 0x1d5   : >> { %v1007_v2 = vpop.eup %1006 }
 0x1d6   : >> { %v1009_v5 = vpop.eup %1008  ;;  %v596_v17 = vmul.f32 %v1007_v2, %v594_v8 }
 0x1d7   : >> { %v710_v21 = vmul.f32 %v1009_v5, %v708_v18 }
 0x236   : >> { %v599_v3 = vpop.permute.xlu0 %598 }
 0x237   : >> { %v601_v4 = vmul.f32 %v1007_v2, %v599_v3 }
 0x239   : >> { %603 = vrot.lane.b32.xlu0 %v601_v4, %s1033_s25 }
 0x23a   : >> { %v713_v6 = vpop.permute.xlu0 %712 }
 0x23b   : >> { %v715_v7 = vmul.f32 %v1009_v5, %v713_v6 }
 0x23d   : >> { %717 = vrot.lane.b32.xlu1 %v715_v7, %s1033_s25 }
 0x2ab   : >> { %v604_v19 = vpop.permute.xlu0 %603 }
 0x2ac   : >> { %v606_v20 = vadd.f32 %v604_v19, %v596_v17 }
 0x2ae   : >> { %1010 = vtanh.f32 %v606_v20 }
 0x2af   : >> { %v718_v22 = vpop.permute.xlu1 %717 }
 0x2b0   : >> { %v720_v23 = vadd.f32 %v718_v22, %v710_v21 }
 0x2b2   : >> { %1012 = vtanh.f32 %v720_v23 }
 0x2bb   : >> { %v1011_v24 = vpop.eup %1010 }
 0x2bc   : >> { %609 = vrot.lane.b32.xlu0 %v1011_v24, %s1033_s25 }
 0x2bf   : >> { %v1013_v25 = vpop.eup %1012 }
 0x2c0   : >> { %723 = vrot.lane.b32.xlu1 %v1013_v25, %s1033_s25 }
 0x2c4   : >> { %619 = vrot.lane.b32.xlu1 %v606_v20, %s1034_s7 }
 0x32e   : >> { %v610_v26 = vpop.permute.xlu0 %609 }
 0x32f   : >> { %v612_v27 = vmul.f32 %v1007_v2, %v610_v26 }
 0x331   : >> { %614 = vrot.lane.b32.xlu0 %v612_v27, %s1035_s8  ;;  %v920_v29 = vpack.c.bf16 %v612_v27, %v612_v27 }
 0x332   : >> { %v724_v28 = vpop.permute.xlu1 %723 }
 0x333   : >> { %v726_v30 = vmul.f32 %v1009_v5, %v724_v28 }
 0x335   : >> { %728 = vrot.lane.b32.xlu1 %v726_v30, %s1035_s8  ;;  %627 = vrot.lane.b32.xlu0 %v920_v29, %s1035_s8  ;;  %v921_v32 = vpack.c.bf16 %v726_v30, %v726_v30 }
 0x336   : >> { %v620_v31 = vpop.permute.xlu1 %619 }
 0x337   : >> { %622 = vst.msk [vmem:[#allocation4] sm:$0xff] %vm350_vm1, %v620_v31 }
 0x339   : >> { %741 = vrot.lane.b32.xlu1 %v921_v32, %s1035_s8  ;;  %733 = vrot.lane.b32.xlu0 %v720_v23, %s1034_s7 }
 0x3a3   : >> { %v615_v33 = vpop.permute.xlu0 %614 }
 0x3a4   : >> { %617 = vst.msk [vmem:[#allocation2] sm:$0xff] %vm350_vm1, %v615_v33 }
 0x3a7   : >> { %v729_v34 = vpop.permute.xlu1 %728  ;;  %v628_v35 = vpop.permute.xlu0 %627 }
 0x3a8   : >> { %731 = vst.msk [vmem:[#allocation3] sm:$0xff] %vm350_vm1, %v729_v34 }
 0x3a9   : >> { %635 = vst.msk [vmem:[%s633_s13] sm:$0xf] %vm634_vm3, %v628_v35 }
 0x3ab   : >> { %v742_v36 = vpop.permute.xlu1 %741  ;;  %v734_v37 = vpop.permute.xlu0 %733 }
 0x3ac   : >> { %748 = vst.msk [vmem:[%s747_s16] sm:$0xf] %vm634_vm3, %v742_v36 }
 0x3ad   : >> { %736 = vst.msk [vmem:[#allocation5] sm:$0xff] %vm350_vm1, %v734_v37  ;;  %521 = sbr.rel (!%p519_p6) target bundleno = 234 (0xea), region = 103 }
 0x3b2 PF: > { %s17_s21 = sadd.s32 1, %s1024_s21  }
 0x3b3   : > { %p14_p7 = scmp.ge.s32.totalorder %s17_s21, 4  }
 0x3b5   :  { %16 = sbr.rel (!%p14_p7) target bundleno = 1 (0x1), region = 114 }

</bundles_post_ra>
